<compile_context>
chip_gen: v7x
topology: tpu7x:2x2x1
jax: 0.10.0
libtpu: 0.0.40
codegen_flags: <defaults>
</compile_context>

<pallas_src>
import jax
import jax.numpy as jnp
from jax.experimental import pallas as pl
from jax.experimental.pallas import tpu as pltpu

H1, H2 = 400, 300          # true hidden sizes (nn.Linear)
H1P, H2P = 512, 384        # lane-padded hidden sizes (multiples of 128)
TILE_B = 256               # default batch tile (multiple of 8, fills MXU M dim)


def _round_up(n, m):
    return (n + m - 1) // m * m


def _pad_to(a, shape):
    return jnp.pad(a, [(0, t - s) for s, t in zip(a.shape, shape)])


def _q_hat_kernel(x_ref, u_ref, w1_ref, b1_ref, w2x_ref, w2u_ref, b2_ref,
                  w3_ref, b3_ref, o_ref):
    # ----- Layer 1: relu(x @ W1 + b1)  (MXU, bf16 operands, f32 accumulate) --
    h1 = jnp.dot(x_ref[...].astype(w1_ref.dtype), w1_ref[...],
                 preferred_element_type=jnp.float32)
    h1 = jnp.maximum(h1 + b1_ref[...], 0.0)                  # (TILE_B, H1P) f32

    # ----- Layer 2: relu(h1 @ W2x + u @ W2u + b2) ----------------------------
    # Big K=H1P matmul on the MXU.
    h2 = jnp.dot(h1.astype(w2x_ref.dtype), w2x_ref[...],
                 preferred_element_type=jnp.float32)          # (TILE_B, H2P)
    # Tiny K=action_dim branch on the VALU slots (overlaps with the MXU work).
    u = u_ref[...]                                            # (TILE_B, A) f32
    w2u = w2u_ref[...]                                        # (A, H2P)    f32
    for k in range(u.shape[1]):                               # static unroll
        h2 = h2 + u[:, k:k + 1] * w2u[k:k + 1, :]
    h2 = jnp.maximum(h2 + b2_ref[...], 0.0)                   # (TILE_B, H2P) f32

    # ----- Layer 3: h2 @ W3 + b3, N=1 -> VPU multiply + XLU lane reduction ---
    q = jnp.sum(h2 * w3_ref[...], axis=-1, keepdims=True)     # (TILE_B, 1)
    o_ref[...] = q + b3_ref[...]
    # TODO(synk): for store-bound very-large-B cases, emit a lane-dense
    # (grid, TILE_B) output slab instead of a (TILE_B, 1) column.


def compute_q_hat(x, u, kparams, tile_b=TILE_B):
    """x: (B, state_dim) f32, u: (B, action_dim) f32 -> (B, 1) f32."""
    w1, b1, w2x, w2u, b2, w3, b3 = kparams
    B, S = x.shape
    A = u.shape[1]

    tile_b = min(tile_b, _round_up(B, 8))
    b_pad = _round_up(B, tile_b)
    if b_pad != B:
        x = jnp.pad(x, ((0, b_pad - B), (0, 0)))
        u = jnp.pad(u, ((0, b_pad - B), (0, 0)))
    grid = (b_pad // tile_b,)

    def act_spec(feat):
        return pl.BlockSpec((tile_b, feat), lambda i: (i, 0))

    def res_spec(r, c):            # VMEM-resident param, DMA'd once
        return pl.BlockSpec((r, c), lambda i: (0, 0))

    param_bytes = sum(int(a.size) * a.dtype.itemsize for a in kparams)
    cost = pl.CostEstimate(
        flops=2 * b_pad * (S * H1P + H1P * H2P + A * H2P + H2P),
        transcendentals=0,
        bytes_accessed=param_bytes + b_pad * (S + A + 1) * 4,
    )

    out = pl.pallas_call(
        _q_hat_kernel,
        out_shape=jax.ShapeDtypeStruct((b_pad, 1), jnp.float32),
        grid=grid,
        in_specs=[
            act_spec(S),              # x
            act_spec(A),              # u
            res_spec(S, H1P),         # W1   (bf16)
            res_spec(1, H1P),         # b1
            res_spec(H1P, H2P),       # W2x  (bf16)
            res_spec(A, H2P),         # W2u
            res_spec(1, H2P),         # b2
            res_spec(1, H2P),         # W3 (stored as a row)
            res_spec(1, 1),           # b3
        ],
        out_specs=pl.BlockSpec((tile_b, 1), lambda i: (i, 0)),
        compiler_params=pltpu.CompilerParams(
            dimension_semantics=("parallel",)),
        cost_estimate=cost,
    )(x, u, w1, b1, w2x, w2u, b2, w3, b3)
    return out[:B]


def init_params(key, state_dim, action_dim):
    """True-shape params matching torch nn.Linear init U(-1/sqrt(fan_in), .).
    Weights are stored transposed as (in_features, out_features)."""
    ks = jax.random.split(key, 6)

    def lin(kw, kb, fan_in, fan_out):
        bound = 1.0 / float(fan_in) ** 0.5
        w = jax.random.uniform(kw, (fan_in, fan_out), jnp.float32, -bound, bound)
        b = jax.random.uniform(kb, (fan_out,), jnp.float32, -bound, bound)
        return w, b

    w1, b1 = lin(ks[0], ks[1], state_dim, H1)
    w2, b2 = lin(ks[2], ks[3], H1 + action_dim, H2)
    w3, b3 = lin(ks[4], ks[5], H2, 1)
    return (w1, b1, w2, b2, w3, b3)


def prepare_params(params, mxu_dtype=jnp.bfloat16):
    """Split / zero-pad / cast true-shape params into the kernel layout."""
    w1, b1, w2, b2, w3, b3 = params
    S = w1.shape[0]
    A = w2.shape[0] - H1
    w2x, w2u = w2[:H1, :], w2[H1:, :]
    return (
        _pad_to(w1, (S, H1P)).astype(mxu_dtype),        # (S, 512)   bf16
        _pad_to(b1.reshape(1, H1), (1, H1P)),           # (1, 512)   f32
        _pad_to(w2x, (H1P, H2P)).astype(mxu_dtype),     # (512, 384) bf16
        _pad_to(w2u, (A, H2P)),                         # (A, 384)   f32
        _pad_to(b2.reshape(1, H2), (1, H2P)),           # (1, 384)   f32
        _pad_to(w3.reshape(1, H2), (1, H2P)),           # (1, 384)   f32
        b3.reshape(1, 1),                               # (1, 1)     f32
    )


def reference(x, u, params):
    """Exact f32 forward of the PyTorch module."""
    w1, b1, w2, b2, w3, b3 = params
    h1 = jax.nn.relu(x @ w1 + b1)
    h2 = jax.nn.relu(jnp.concatenate([h1, u], axis=1) @ w2 + b2)
    return h2 @ w3 + b3


if __name__ == "__main__":
    B, state_dim, action_dim = 8, 16, 4

    key = jax.random.PRNGKey(0)
    kx, ku, kp = jax.random.split(key, 3)
    x = jax.random.normal(kx, (B, state_dim), jnp.float32)
    u = jax.random.normal(ku, (B, action_dim), jnp.float32)

    params = init_params(kp, state_dim, action_dim)
    kparams = prepare_params(params)

    q = compute_q_hat(x, u, kparams)
    jax.block_until_ready(q)

    q_ref = reference(x, u, params)
    assert q.shape == (B, 1)
    # bf16 MXU operands (f32 accumulation) -> bf16-level tolerance vs f32 ref.
    assert jnp.allclose(q, q_ref, atol=2e-2, rtol=2e-2), float(
        jnp.max(jnp.abs(q - q_ref)))

    print("KERNEL_OK")
</pallas_src>

<mosaic_0001>
module attributes {stable_mosaic.version = 11 : i64} {
  func.func @_q_hat_kernel(%arg0: i32, %arg1: memref<8x16xf32, #tpu.memory_space<vmem>>, %arg2: memref<8x4xf32, #tpu.memory_space<vmem>>, %arg3: memref<16x512xbf16, #tpu.memory_space<vmem>>, %arg4: memref<1x512xf32, #tpu.memory_space<vmem>>, %arg5: memref<512x384xbf16, #tpu.memory_space<vmem>>, %arg6: memref<4x384xf32, #tpu.memory_space<vmem>>, %arg7: memref<1x384xf32, #tpu.memory_space<vmem>>, %arg8: memref<1x384xf32, #tpu.memory_space<vmem>>, %arg9: memref<1x1xf32, #tpu.memory_space<vmem>>, %arg10: memref<8x1xf32, #tpu.memory_space<vmem>>) attributes {dimension_semantics = [#tpu.dimension_semantics<parallel>], iteration_bounds = array<i64: 1>, scalar_prefetch = 0 : i64, scratch_operands = 0 : i64, tpu.core_type = #tpu.core_type<tc>, window_params = [{transform_indices = @transform_0, window_bounds = array<i64: 8, 16>}, {transform_indices = @transform_1, window_bounds = array<i64: 8, 4>}, {pipeline_mode = #tpu.pipeline_mode<synchronous>, transform_indices = @transform_2, window_bounds = array<i64: 16, 512>}, {pipeline_mode = #tpu.pipeline_mode<synchronous>, transform_indices = @transform_3, window_bounds = array<i64: 1, 512>}, {pipeline_mode = #tpu.pipeline_mode<synchronous>, transform_indices = @transform_4, window_bounds = array<i64: 512, 384>}, {pipeline_mode = #tpu.pipeline_mode<synchronous>, transform_indices = @transform_5, window_bounds = array<i64: 4, 384>}, {pipeline_mode = #tpu.pipeline_mode<synchronous>, transform_indices = @transform_6, window_bounds = array<i64: 1, 384>}, {pipeline_mode = #tpu.pipeline_mode<synchronous>, transform_indices = @transform_7, window_bounds = array<i64: 1, 384>}, {pipeline_mode = #tpu.pipeline_mode<synchronous>, transform_indices = @transform_8, window_bounds = array<i64: 1, 1>}, {transform_indices = @transform_9, window_bounds = array<i64: 8, 1>}]} {
    %c0 = arith.constant 0 : index
    %c0_0 = arith.constant 0 : index
    %0 = vector.load %arg1[%c0, %c0_0] : memref<8x16xf32, #tpu.memory_space<vmem>>, vector<8x16xf32>
    %1 = arith.truncf %0 : vector<8x16xf32> to vector<8x16xbf16>
    %c0_1 = arith.constant 0 : index
    %c0_2 = arith.constant 0 : index
    %2 = vector.load %arg3[%c0_1, %c0_2] : memref<16x512xbf16, #tpu.memory_space<vmem>>, vector<16x512xbf16>
    %cst = arith.constant dense<0.000000e+00> : vector<8x512xf32>
    %3 = tpu.matmul %1, %2, %cst {dimension_numbers = #tpu.dot_dimension_numbers<[1], [0], [0], [1], [0, 0, 1, 1], [], []>} : vector<8x16xbf16>, vector<16x512xbf16>, vector<8x512xf32> -> vector<8x512xf32>
    %c0_3 = arith.constant 0 : index
    %c0_4 = arith.constant 0 : index
    %4 = vector.load %arg4[%c0_3, %c0_4] : memref<1x512xf32, #tpu.memory_space<vmem>>, vector<1x512xf32>
    %5 = vector.broadcast %4 : vector<1x512xf32> to vector<8x512xf32>
    %6 = arith.addf %3, %5 : vector<8x512xf32>
    %cst_5 = arith.constant 0.000000e+00 : f32
    %7 = vector.broadcast %cst_5 : f32 to vector<8x512xf32>
    %8 = arith.maximumf %6, %7 : vector<8x512xf32>
    %9 = arith.truncf %8 : vector<8x512xf32> to vector<8x512xbf16>
    %c0_6 = arith.constant 0 : index
    %c0_7 = arith.constant 0 : index
    %10 = vector.load %arg5[%c0_6, %c0_7] : memref<512x384xbf16, #tpu.memory_space<vmem>>, vector<512x384xbf16>
    %cst_8 = arith.constant dense<0.000000e+00> : vector<8x384xf32>
    %11 = tpu.matmul %9, %10, %cst_8 {dimension_numbers = #tpu.dot_dimension_numbers<[1], [0], [0], [1], [0, 0, 1, 1], [], []>} : vector<8x512xbf16>, vector<512x384xbf16>, vector<8x384xf32> -> vector<8x384xf32>
    %c0_9 = arith.constant 0 : index
    %c0_10 = arith.constant 0 : index
    %12 = vector.load %arg2[%c0_9, %c0_10] : memref<8x4xf32, #tpu.memory_space<vmem>>, vector<8x4xf32>
    %c0_11 = arith.constant 0 : index
    %c0_12 = arith.constant 0 : index
    %13 = vector.load %arg6[%c0_11, %c0_12] : memref<4x384xf32, #tpu.memory_space<vmem>>, vector<4x384xf32>
    %14 = vector.extract_strided_slice %12 {offsets = [0, 0], sizes = [8, 1], strides = [1, 1]} : vector<8x4xf32> to vector<8x1xf32>
    %15 = vector.extract_strided_slice %13 {offsets = [0, 0], sizes = [1, 384], strides = [1, 1]} : vector<4x384xf32> to vector<1x384xf32>
    %16 = vector.broadcast %14 : vector<8x1xf32> to vector<8x384xf32>
    %17 = vector.broadcast %15 : vector<1x384xf32> to vector<8x384xf32>
    %18 = arith.mulf %16, %17 : vector<8x384xf32>
    %19 = arith.addf %11, %18 : vector<8x384xf32>
    %20 = vector.extract_strided_slice %12 {offsets = [0, 1], sizes = [8, 1], strides = [1, 1]} : vector<8x4xf32> to vector<8x1xf32>
    %21 = vector.extract_strided_slice %13 {offsets = [1, 0], sizes = [1, 384], strides = [1, 1]} : vector<4x384xf32> to vector<1x384xf32>
    %22 = vector.broadcast %20 : vector<8x1xf32> to vector<8x384xf32>
    %23 = vector.broadcast %21 : vector<1x384xf32> to vector<8x384xf32>
    %24 = arith.mulf %22, %23 : vector<8x384xf32>
    %25 = arith.addf %19, %24 : vector<8x384xf32>
    %26 = vector.extract_strided_slice %12 {offsets = [0, 2], sizes = [8, 1], strides = [1, 1]} : vector<8x4xf32> to vector<8x1xf32>
    %27 = vector.extract_strided_slice %13 {offsets = [2, 0], sizes = [1, 384], strides = [1, 1]} : vector<4x384xf32> to vector<1x384xf32>
    %28 = vector.broadcast %26 : vector<8x1xf32> to vector<8x384xf32>
    %29 = vector.broadcast %27 : vector<1x384xf32> to vector<8x384xf32>
    %30 = arith.mulf %28, %29 : vector<8x384xf32>
    %31 = arith.addf %25, %30 : vector<8x384xf32>
    %32 = vector.extract_strided_slice %12 {offsets = [0, 3], sizes = [8, 1], strides = [1, 1]} : vector<8x4xf32> to vector<8x1xf32>
    %33 = vector.extract_strided_slice %13 {offsets = [3, 0], sizes = [1, 384], strides = [1, 1]} : vector<4x384xf32> to vector<1x384xf32>
    %34 = vector.broadcast %32 : vector<8x1xf32> to vector<8x384xf32>
    %35 = vector.broadcast %33 : vector<1x384xf32> to vector<8x384xf32>
    %36 = arith.mulf %34, %35 : vector<8x384xf32>
    %37 = arith.addf %31, %36 : vector<8x384xf32>
    %c0_13 = arith.constant 0 : index
    %c0_14 = arith.constant 0 : index
    %38 = vector.load %arg7[%c0_13, %c0_14] : memref<1x384xf32, #tpu.memory_space<vmem>>, vector<1x384xf32>
    %39 = vector.broadcast %38 : vector<1x384xf32> to vector<8x384xf32>
    %40 = arith.addf %37, %39 : vector<8x384xf32>
    %cst_15 = arith.constant 0.000000e+00 : f32
    %41 = vector.broadcast %cst_15 : f32 to vector<8x384xf32>
    %42 = arith.maximumf %40, %41 : vector<8x384xf32>
    %c0_16 = arith.constant 0 : index
    %c0_17 = arith.constant 0 : index
    %43 = vector.load %arg8[%c0_16, %c0_17] : memref<1x384xf32, #tpu.memory_space<vmem>>, vector<1x384xf32>
    %44 = vector.broadcast %43 : vector<1x384xf32> to vector<8x384xf32>
    %45 = arith.mulf %42, %44 : vector<8x384xf32>
    %cst_18 = arith.constant dense<0.000000e+00> : vector<8xf32>
    %46 = vector.multi_reduction <add>, %45, %cst_18 [1] : vector<8x384xf32> to vector<8xf32>
    %47 = vector.shape_cast %46 : vector<8xf32> to vector<8x1xf32>
    %c0_19 = arith.constant 0 : index
    %c0_20 = arith.constant 0 : index
    %48 = vector.load %arg9[%c0_19, %c0_20] : memref<1x1xf32, #tpu.memory_space<vmem>>, vector<1x1xf32>
    %49 = vector.broadcast %48 : vector<1x1xf32> to vector<8x1xf32>
    %50 = arith.addf %47, %49 : vector<8x1xf32>
    %c0_21 = arith.constant 0 : index
    %c0_22 = arith.constant 0 : index
    %51 = vector.load %arg10[%c0_21, %c0_22] : memref<8x1xf32, #tpu.memory_space<vmem>>, vector<8x1xf32>
    tpu.vector_store %arg10[%c0_21, %c0_22], %50 {strides = array<i32>} : memref<8x1xf32, #tpu.memory_space<vmem>>, vector<8x1xf32>,
    return
  }
  func.func @transform_0(%arg0: i32) -> (i32, i32) {
    %c0_i32 = arith.constant 0 : i32
    %c0_i32_0 = arith.constant 0 : i32
    return %arg0, %c0_i32 : i32, i32
  }
  func.func @transform_1(%arg0: i32) -> (i32, i32) {
    %c0_i32 = arith.constant 0 : i32
    %c0_i32_0 = arith.constant 0 : i32
    return %arg0, %c0_i32 : i32, i32
  }
  func.func @transform_2(%arg0: i32) -> (i32, i32) {
    %c0_i32 = arith.constant 0 : i32
    %c0_i32_0 = arith.constant 0 : i32
    %c0_i32_1 = arith.constant 0 : i32
    return %c0_i32, %c0_i32_0 : i32, i32
  }
  func.func @transform_3(%arg0: i32) -> (i32, i32) {
    %c0_i32 = arith.constant 0 : i32
    %c0_i32_0 = arith.constant 0 : i32
    %c0_i32_1 = arith.constant 0 : i32
    return %c0_i32, %c0_i32_0 : i32, i32
  }
  func.func @transform_4(%arg0: i32) -> (i32, i32) {
    %c0_i32 = arith.constant 0 : i32
    %c0_i32_0 = arith.constant 0 : i32
    %c0_i32_1 = arith.constant 0 : i32
    return %c0_i32, %c0_i32_0 : i32, i32
  }
  func.func @transform_5(%arg0: i32) -> (i32, i32) {
    %c0_i32 = arith.constant 0 : i32
    %c0_i32_0 = arith.constant 0 : i32
    %c0_i32_1 = arith.constant 0 : i32
    return %c0_i32, %c0_i32_0 : i32, i32
  }
  func.func @transform_6(%arg0: i32) -> (i32, i32) {
    %c0_i32 = arith.constant 0 : i32
    %c0_i32_0 = arith.constant 0 : i32
    %c0_i32_1 = arith.constant 0 : i32
    return %c0_i32, %c0_i32_0 : i32, i32
  }
  func.func @transform_7(%arg0: i32) -> (i32, i32) {
    %c0_i32 = arith.constant 0 : i32
    %c0_i32_0 = arith.constant 0 : i32
    %c0_i32_1 = arith.constant 0 : i32
    return %c0_i32, %c0_i32_0 : i32, i32
  }
  func.func @transform_8(%arg0: i32) -> (i32, i32) {
    %c0_i32 = arith.constant 0 : i32
    %c0_i32_0 = arith.constant 0 : i32
    %c0_i32_1 = arith.constant 0 : i32
    return %c0_i32, %c0_i32_0 : i32, i32
  }
  func.func @transform_9(%arg0: i32) -> (i32, i32) {
    %c0_i32 = arith.constant 0 : i32
    %c0_i32_0 = arith.constant 0 : i32
    return %arg0, %c0_i32 : i32, i32
  }
}

</mosaic_0001>

<bundles_post_ra>
// kernel: tpu_custom_call.1
= control target key start
LH: loop header
LB: loop body
LE: loop exit
PB: predicated region body
PF: predicated region fallthrough
CT: control target
= control target key end

     0   :  { %s1752_s0 = inlined_call_operand.vmem [shape: f32[8,16], index: 0, kind: input, shape index: {}]   ;;  %s1753_s1 = inlined_call_operand.vmem [shape: f32[8,4], index: 1, kind: input, shape index: {}]   ;;  %s1754_s2 = inlined_call_operand.hbm [shape: bf16[16,512], index: 2, kind: input, shape index: {}]   ;;  %s1755_s3 = inlined_call_operand.vmem [shape: f32[1,512], index: 3, kind: input, shape index: {}]   ;;  %s1756_s4 = inlined_call_operand.hbm [shape: bf16[512,384], index: 4, kind: input, shape index: {}]   ;;  %s1757_s5 = inlined_call_operand.vmem [shape: f32[4,384], index: 5, kind: input, shape index: {}]   ;;  %s1758_s6 = inlined_call_operand.vmem [shape: f32[1,384], index: 6, kind: input, shape index: {}]   ;;  %s1759_s7 = inlined_call_operand.vmem [shape: f32[1,384], index: 7, kind: input, shape index: {}]   ;;  %s1760_s8 = inlined_call_operand.<no memory space> [shape: f32[1,1], index: 8, kind: input, shape index: {}]   ;;  %s1761_s9 = inlined_call_operand.vmem [shape: f32[8,1], index: 9, kind: output, shape index: {}]  }
   0x1   :  { %v14_v0 = vstv %s1760_s8 }
   0x2   :  { %15 = vst [vmem:[#allocation2] sm:$0x1] %v14_v0 }
   0x3   :  { %16 = vsyncpa [#allocation4], 0 }
   0x4   :  { %17 = vsyncpa [#allocation6], 0  ;;  %s1565_s11 = smov [#allocation3]   ;;  %s1517_s15 = scalar_lea.hbm %s1754_s2, 512 }
   0x5   :  { %s27_s12 = sshll.u32 %s1565_s11, 4  ;;  %p1518_p0 = scmp.ne.s32.totalorder %s1754_s2, %s1517_s15  ;;  %s28_s12 = int_to_ptr.vmem [resolvable:$true] %s27_s12 }
   0x6   :  { %p1521_p1 = scmp.lt.u32.totalorder %s1517_s15, %s1754_s2 }
   0x8   :  { %p1523_p2 = pnand %p1521_p1, %p1518_p0 }
   0xa   :  { %1526 = shalt.err (!%p1523_p2)
}
   0xb   :  { %s1527_s8 = scalar_lea.vmem %s28_s12, 512  ;;  %p1532_p4 = scmp.lt.s32.totalorder %s28_s12, %s28_s12 }
   0xc   :  { %p1528_p3 = scmp.ne.s32.totalorder %s28_s12, %s1527_s8  ;;  %p1533_p5 = scmp.lt.s32.totalorder %s1527_s8, %s1527_s8 }
   0xe   :  { %p1534_p6 = por %p1533_p5, %p1532_p4 }
  0x10   :  { %p1535_p7 = pnand %p1534_p6, %p1528_p3 }
  0x12   :  { %1538 = shalt.err (!%p1535_p7)
}
  0x13   :  { %s1566_s20 = smov 256   ;;  %s1567_s21 = smov 16  }
  0x14   :  { %33 = dma.hbm_to_vmem [thread:$0]  %s1754_s2, 512, %s28_s12, [#allocation4], %s1566_s20, %s1566_s20, %s1567_s21  }
  0x15   :  { %s1568_s24 = smov [#allocation5]   ;;  %s1539_s28 = scalar_lea.hbm %s1756_s4, 12288 }
  0x16   :  { %s41_s25 = sshll.u32 %s1568_s24, 4  ;;  %p1540_p8 = scmp.ne.s32.totalorder %s1756_s4, %s1539_s28  ;;  %s42_s25 = int_to_ptr.vmem [resolvable:$true] %s41_s25 }
  0x17   :  { %p1543_p9 = scmp.lt.u32.totalorder %s1539_s28, %s1756_s4 }
  0x19   :  { %p1545_p10 = pnand %p1543_p9, %p1540_p8 }
  0x1b   :  { %1548 = shalt.err (!%p1545_p10)
}
  0x1c   :  { %s1549_s13 = scalar_lea.vmem %s42_s25, 12288  ;;  %p1554_p12 = scmp.lt.s32.totalorder %s42_s25, %s42_s25 }
  0x1d   :  { %p1550_p11 = scmp.ne.s32.totalorder %s42_s25, %s1549_s13  ;;  %p1555_p13 = scmp.lt.s32.totalorder %s1549_s13, %s1549_s13 }
  0x1f   :  { %p1556_p0 = por %p1555_p13, %p1554_p12 }
  0x21   :  { %p1557_p1 = pnand %p1556_p0, %p1550_p11 }
  0x23   :  { %1560 = shalt.err (!%p1557_p1)
}
  0x24   :  { %s1569_s2 = smov 192   ;;  %s1570_s12 = smov 12  }
  0x25   :  { %47 = dma.hbm_to_vmem [thread:$0]  %s1756_s4, 12288, %s42_s25, [#allocation6], %s1569_s2, %s1569_s2, %s1570_s12  }
  0x26   :  { %1561 = dma.done.wait [#allocation4], 512  }
  0x27   :  { %1562 = vsyncadd [#allocation4], 4294966784 }
  0x28   :  { %1563 = dma.done.wait [#allocation6], 12288  }
  0x29   :  { %1564 = vsyncadd [#allocation6], 4294955008  ;;  %v1571_v1 = vmov 0   ;;  %v1383_v2 = vld [vmem:[#allocation3 + $0x4] ss:$16 sps:$4 sm:$0xff]   ;;  %vm111_vm0 = vcmask 130048  }
  0x2a   :  { %147 = vmatprep.mubr.bf16.mxu0 %v1571_v1  ;;  %188 = vmatprep.mubr.bf16.mxu1 %v1571_v1  ;;  %v1385_v3 = vld [vmem:[#allocation3 + $0xc] ss:$16 sps:$4 sm:$0xff]   ;;  %v1387_v4 = vld [vmem:[#allocation3] ss:$16 sps:$4 sm:$0xff]   ;;  %v1388_v5 = vld [vmem:[#allocation3 + $0x8] ss:$16 sps:$4 sm:$0xff]  }
  0x2b   :  { %1378 = vset.pattern.permute.xlu0 %v1571_v1  ;;  %115 = vmatprep.subr.bf16.mxu0 %v1383_v2  ;;  %v63_v6 = vld [vmem:[%s1752_s0] sm:$0xff]  ;;  %v1409_v20 = vld [vmem:[#allocation5 + $0x4c] ss:$12 sps:$4 sm:$0xff]   ;;  %v1407_v22 = vld [vmem:[#allocation5 + $0x48] ss:$12 sps:$4 sm:$0xff]   ;;  %vm1213_vm1 = vcmask 7168  }
  0x2c   :  { %156 = vmatprep.subr.bf16.mxu1 %v1385_v3  ;;  %v64_v7 = vpack.c.bf16 %v63_v6, %v63_v6  ;;  %v1389_v8 = vld [vmem:[#allocation5] ss:$12 sps:$4 sm:$0xff]   ;;  %116 = vmatpush1.bf16.msra.mxu0 %v1387_v4  ;;  %v1391_v9 = vld [vmem:[#allocation5 + $0x4] ss:$12 sps:$4 sm:$0xff]   ;;  %v1397_v12 = vld [vmem:[#allocation5 + $0x1c] ss:$12 sps:$4 sm:$0xff]  }
  0x2d   :  { %157 = vmatpush1.bf16.msra.mxu1 %v1388_v5  ;;  %v1392_v10 = vld [vmem:[#allocation5 + $0x180] ss:$12 sps:$4 sm:$0xff]   ;;  %v1394_v11 = vld [vmem:[#allocation5 + $0x184] ss:$12 sps:$4 sm:$0xff]   ;;  %885 = vmatprep.subr.bf16.mxu0 %v1391_v9  ;;  %v1400_v14 = vld [vmem:[#allocation5 + $0x19c] ss:$12 sps:$4 sm:$0xff]  }
  0x2e   :  { %v1395_v13 = vld [vmem:[#allocation5 + $0x18] ss:$12 sps:$4 sm:$0xff]   ;;  %926 = vmatprep.subr.bf16.mxu1 %v1394_v11  ;;  %v1403_v16 = vld [vmem:[#allocation5 + $0x34] ss:$12 sps:$4 sm:$0xff]   ;;  %v1401_v18 = vld [vmem:[#allocation5 + $0x30] ss:$12 sps:$4 sm:$0xff]  }
  0x2f   :  { %1225 = vmatmul.mubr.msk.bf16.vlgmr.msra.gmra.mrb[0].mxu0 %vm111_vm0, %v64_v7  ;;  %v1398_v15 = vld [vmem:[#allocation5 + $0x198] ss:$12 sps:$4 sm:$0xff]   ;;  %v1406_v17 = vld [vmem:[#allocation5 + $0x1b4] ss:$12 sps:$4 sm:$0xff]   ;;  %v1404_v19 = vld [vmem:[#allocation5 + $0x1b0] ss:$12 sps:$4 sm:$0xff]  }
  0x30   :  { %1226 = vmatmul.mubr.msk.bf16.vlgmr.msra.gmra.mrb[0].mxu1 %vm111_vm0, %v64_v7  ;;  %886 = vmatpush1.bf16.msra.mxu0 %v1389_v8  ;;  %v1412_v21 = vld [vmem:[#allocation5 + $0x1cc] ss:$12 sps:$4 sm:$0xff]   ;;  %v1410_v23 = vld [vmem:[#allocation5 + $0x1c8] ss:$12 sps:$4 sm:$0xff]   ;;  %v1415_v24 = vld [vmem:[#allocation5 + $0x64] ss:$12 sps:$4 sm:$0xff]  }
  0x31   :  { %927 = vmatpush1.bf16.msra.mxu1 %v1392_v10  ;;  %887 = vmatprep.subr.bf16.mxu0 %v1397_v12  ;;  %v1418_v25 = vld [vmem:[#allocation5 + $0x1e4] ss:$12 sps:$4 sm:$0xff]   ;;  %v1413_v26 = vld [vmem:[#allocation5 + $0x60] ss:$12 sps:$4 sm:$0xff]   ;;  %v1421_v28 = vld [vmem:[#allocation5 + $0x7c] ss:$12 sps:$4 sm:$0xff]  }
  0x32   :  { %928 = vmatprep.subr.bf16.mxu1 %v1400_v14  ;;  %v1416_v27 = vld [vmem:[#allocation5 + $0x1e0] ss:$12 sps:$4 sm:$0xff]   ;;  %v1424_v29 = vld [vmem:[#allocation5 + $0x1fc] ss:$12 sps:$4 sm:$0xff]   ;;  %v1419_v30 = vld [vmem:[#allocation5 + $0x78] ss:$12 sps:$4 sm:$0xff]   ;;  %v71_v14 = vlaneseq }
  0x33   :  { %v1422_v31 = vld [vmem:[#allocation5 + $0x1f8] ss:$12 sps:$4 sm:$0xff]   ;;  %v1427_v32 = vld [vmem:[#allocation5 + $0x94] ss:$12 sps:$4 sm:$0xff]   ;;  %v1425_v34 = vld [vmem:[#allocation5 + $0x90] ss:$12 sps:$4 sm:$0xff]  }
  0x34   :  { %888 = vmatpush1.bf16.msra.mxu0 %v1395_v13  ;;  %v1430_v33 = vld [vmem:[#allocation5 + $0x214] ss:$12 sps:$4 sm:$0xff]   ;;  %v1428_v35 = vld [vmem:[#allocation5 + $0x210] ss:$12 sps:$4 sm:$0xff]   ;;  %v1433_v36 = vld [vmem:[#allocation5 + $0xac] ss:$12 sps:$4 sm:$0xff]  }
  0x35   :  { %929 = vmatpush1.bf16.msra.mxu1 %v1398_v15  ;;  %889 = vmatprep.subr.bf16.mxu0 %v1403_v16  ;;  %v1436_v37 = vld [vmem:[#allocation5 + $0x22c] ss:$12 sps:$4 sm:$0xff]   ;;  %v1431_v38 = vld [vmem:[#allocation5 + $0xa8] ss:$12 sps:$4 sm:$0xff]   ;;  %v1439_v40 = vld [vmem:[#allocation5 + $0xc4] ss:$12 sps:$4 sm:$0xff]  }
  0x36   :  { %930 = vmatprep.subr.bf16.mxu1 %v1406_v17  ;;  %v1434_v39 = vld [vmem:[#allocation5 + $0x228] ss:$12 sps:$4 sm:$0xff]   ;;  %v1442_v41 = vld [vmem:[#allocation5 + $0x244] ss:$12 sps:$4 sm:$0xff]   ;;  %v1437_v42 = vld [vmem:[#allocation5 + $0xc0] ss:$12 sps:$4 sm:$0xff]  }
  0x37   :  { %v1440_v43 = vld [vmem:[#allocation5 + $0x240] ss:$12 sps:$4 sm:$0xff]   ;;  %v1445_v44 = vld [vmem:[#allocation5 + $0xdc] ss:$12 sps:$4 sm:$0xff]   ;;  %v1443_v45 = vld [vmem:[#allocation5 + $0xd8] ss:$12 sps:$4 sm:$0xff]  }
  0x38   :  { %890 = vmatpush1.bf16.msra.mxu0 %v1401_v18  ;;  %v1448_v46 = vld [vmem:[#allocation5 + $0x25c] ss:$12 sps:$4 sm:$0xff]   ;;  %v1446_v47 = vld [vmem:[#allocation5 + $0x258] ss:$12 sps:$4 sm:$0xff]   ;;  %v1451_v48 = vld [vmem:[#allocation5 + $0xf4] ss:$12 sps:$4 sm:$0xff]  }
  0x39   :  { %931 = vmatpush1.bf16.msra.mxu1 %v1404_v19  ;;  %891 = vmatprep.subr.bf16.mxu0 %v1409_v20  ;;  %v1454_v49 = vld [vmem:[#allocation5 + $0x274] ss:$12 sps:$4 sm:$0xff]   ;;  %v1449_v50 = vld [vmem:[#allocation5 + $0xf0] ss:$12 sps:$4 sm:$0xff]   ;;  %v1457_v52 = vld [vmem:[#allocation5 + $0x10c] ss:$12 sps:$4 sm:$0xff]  }
  0x3a   :  { %932 = vmatprep.subr.bf16.mxu1 %v1412_v21  ;;  %v1452_v51 = vld [vmem:[#allocation5 + $0x270] ss:$12 sps:$4 sm:$0xff]   ;;  %v1460_v53 = vld [vmem:[#allocation5 + $0x28c] ss:$12 sps:$4 sm:$0xff]   ;;  %v1455_v54 = vld [vmem:[#allocation5 + $0x108] ss:$12 sps:$4 sm:$0xff]  }
  0x3b   :  { %v1458_v55 = vld [vmem:[#allocation5 + $0x288] ss:$12 sps:$4 sm:$0xff]   ;;  %v1463_v56 = vld [vmem:[#allocation5 + $0x124] ss:$12 sps:$4 sm:$0xff]   ;;  %v1461_v58 = vld [vmem:[#allocation5 + $0x120] ss:$12 sps:$4 sm:$0xff]  }
  0x3c   :  { %892 = vmatpush1.bf16.msra.mxu0 %v1407_v22  ;;  %v1466_v57 = vld [vmem:[#allocation5 + $0x2a4] ss:$12 sps:$4 sm:$0xff]   ;;  %v1464_v59 = vld [vmem:[#allocation5 + $0x2a0] ss:$12 sps:$4 sm:$0xff]   ;;  %v1469_v60 = vld [vmem:[#allocation5 + $0x13c] ss:$12 sps:$4 sm:$0xff]  }
  0x3d   :  { %933 = vmatpush1.bf16.msra.mxu1 %v1410_v23  ;;  %893 = vmatprep.subr.bf16.mxu0 %v1415_v24  ;;  %v1472_v61 = vld [vmem:[#allocation5 + $0x2bc] ss:$12 sps:$4 sm:$0xff]   ;;  %v1467_v62 = vld [vmem:[#allocation5 + $0x138] ss:$12 sps:$4 sm:$0xff]   ;;  %v1475_v0 = vld [vmem:[#allocation5 + $0x154] ss:$12 sps:$4 sm:$0xff]  }
  0x3e   :  { %934 = vmatprep.subr.bf16.mxu1 %v1418_v25  ;;  %v1470_v63 = vld [vmem:[#allocation5 + $0x2b8] ss:$12 sps:$4 sm:$0xff]   ;;  %v1478_v1 = vld [vmem:[#allocation5 + $0x2d4] ss:$12 sps:$4 sm:$0xff]   ;;  %v1473_v2 = vld [vmem:[#allocation5 + $0x150] ss:$12 sps:$4 sm:$0xff]  }
  0x3f   :  { %v1476_v3 = vld [vmem:[#allocation5 + $0x2d0] ss:$12 sps:$4 sm:$0xff]   ;;  %v1481_v4 = vld [vmem:[#allocation5 + $0x16c] ss:$12 sps:$4 sm:$0xff]   ;;  %v1479_v6 = vld [vmem:[#allocation5 + $0x168] ss:$12 sps:$4 sm:$0xff]  }
  0x40   :  { %894 = vmatpush1.bf16.msra.mxu0 %v1413_v26  ;;  %v1484_v5 = vld [vmem:[#allocation5 + $0x2ec] ss:$12 sps:$4 sm:$0xff]   ;;  %v1482_v7 = vld [vmem:[#allocation5 + $0x2e8] ss:$12 sps:$4 sm:$0xff]   ;;  %v333_v10 = vld [vmem:[%s1753_s1] sm:$0xff]  ;;  %v1572_v11 = vmov 2  }
  0x41   :  { %935 = vmatpush1.bf16.msra.mxu1 %v1416_v27  ;;  %895 = vmatprep.subr.bf16.mxu0 %v1421_v28  ;;  %v1485_v8 = vld [vmem:[#allocation5 + $0xc8] ss:$12 sps:$4 sm:$0xff]   ;;  %v1573_v12 = vmov 1   ;;  %v1574_v13 = vmov 3   ;;  %v1658_v15 = vshrl.u32 %v71_v14, 7 }
  0x42   :  { %936 = vmatprep.subr.bf16.mxu1 %v1424_v29  ;;  %v1486_v9 = vld [vmem:[#allocation5 + $0x248] ss:$12 sps:$4 sm:$0xff]   ;;  %338 = vperm.xlu0 %1378, %v333_v10   ;;  %v69_v18 = vld [vmem:[%s1755_s3] sm:$0xf] }
  0x43   :  { %1380 = vset.pattern.permute.xlu1 %v1572_v11  ;;  %v1661_v16 = vsub.s32 0, %v1658_v15  ;;  %v1664_v17 = vsub.s32 2, %v1658_v15  ;;  %v1670_v19 = vsub.s32 1, %v1658_v15  ;;  %v1673_v20 = vsub.s32 3, %v1658_v15  ;;  %v334_v11 = vld [vmem:[%s1757_s5] sm:$0xff] }
  0x44   :  { %896 = vmatpush1.bf16.msra.mxu0 %v1419_v30  ;;  %1085 = vperm.xlu1 %1380, %v333_v10  }
  0x45   :  { %937 = vmatpush1.bf16.msra.mxu1 %v1422_v31  ;;  %897 = vmatprep.subr.bf16.mxu0 %v1427_v32  ;;  %v74_v21 = vrot.slane %v69_v18, %v1661_v16  ;;  %v82_v22 = vrot.slane %v69_v18, %v1664_v17  ;;  %v78_v23 = vrot.slane %v69_v18, %v1670_v19 }
  0x46   :  { %938 = vmatprep.subr.bf16.mxu1 %v1430_v33  ;;  %1379 = vset.pattern.permute.xlu0 %v1573_v12  ;;  %v86_v24 = vrot.slane %v69_v18, %v1673_v20  ;;  %v349_v12 = vsub.s32 4, %v1658_v15  ;;  %v1057_v18 = vsub.s32 5, %v1658_v15 }
  0x47   :  { %1048 = vperm.xlu0 %1379, %v333_v10  }
  0x48   :  { %898 = vmatpush1.bf16.msra.mxu0 %v1425_v34  ;;  %1381 = vset.pattern.permute.xlu1 %v1574_v13  ;;  %v350_v14 = vrot.slane %v334_v11, %v349_v12 }
  0x49   :  { %939 = vmatpush1.bf16.msra.mxu1 %v1428_v35  ;;  %899 = vmatprep.subr.bf16.mxu0 %v1433_v36 }
  0x4a   :  { %940 = vmatprep.subr.bf16.mxu1 %v1436_v37  ;;  %1122 = vperm.xlu1 %1381, %v333_v10   ;;  %v1516_v10 = vld [vmem:[#allocation5 + $0x230] ss:$12 sps:$4 sm:$0xff]  }
  0x4b   :  { %1382 = vset.pattern.permute.xlu0 %v1574_v13  ;;  %v346_v13 = vrot.slane %v334_v11, %v1661_v16 }
  0x4c   :  { %900 = vmatpush1.bf16.msra.mxu0 %v1431_v38 }
  0x4d   :  { %941 = vmatpush1.bf16.msra.mxu1 %v1434_v39  ;;  %901 = vmatprep.subr.bf16.mxu0 %v1439_v40 }
  0x4e   :  { %942 = vmatprep.subr.bf16.mxu1 %v1442_v41 }
  0x50   :  { %902 = vmatpush1.bf16.msra.mxu0 %v1437_v42 }
  0x51   :  { %943 = vmatpush1.bf16.msra.mxu1 %v1440_v43  ;;  %903 = vmatprep.subr.bf16.mxu0 %v1445_v44  ;;  %v1487_v44 = vld [vmem:[#allocation5 + $0x8] ss:$12 sps:$4 sm:$0xff]  }
  0x52   :  { %944 = vmatprep.subr.bf16.mxu1 %v1448_v46 }
  0x54   :  { %904 = vmatpush1.bf16.msra.mxu0 %v1443_v45  ;;  %v1488_v45 = vld [vmem:[#allocation5 + $0x188] ss:$12 sps:$4 sm:$0xff]  }
  0x55   :  { %945 = vmatpush1.bf16.msra.mxu1 %v1446_v47  ;;  %905 = vmatprep.subr.bf16.mxu0 %v1451_v48  ;;  %v1489_v47 = vld [vmem:[#allocation5 + $0xe0] ss:$12 sps:$4 sm:$0xff]  }
  0x56   :  { %946 = vmatprep.subr.bf16.mxu1 %v1454_v49  ;;  %v1490_v48 = vld [vmem:[#allocation5 + $0x260] ss:$12 sps:$4 sm:$0xff]  }
  0x57   :  { %v1491_v49 = vld [vmem:[#allocation5 + $0x20] ss:$12 sps:$4 sm:$0xff]  }
  0x58   :  { %906 = vmatpush1.bf16.msra.mxu0 %v1449_v50  ;;  %v1492_v50 = vld [vmem:[#allocation5 + $0x1a0] ss:$12 sps:$4 sm:$0xff]  }
  0x59   :  { %947 = vmatpush1.bf16.msra.mxu1 %v1452_v51  ;;  %907 = vmatprep.subr.bf16.mxu0 %v1457_v52  ;;  %v1493_v51 = vld [vmem:[#allocation5 + $0xf8] ss:$12 sps:$4 sm:$0xff]  }
  0x5a   :  { %948 = vmatprep.subr.bf16.mxu1 %v1460_v53  ;;  %v1494_v52 = vld [vmem:[#allocation5 + $0x278] ss:$12 sps:$4 sm:$0xff]  }
  0x5b   :  { %v1495_v53 = vld [vmem:[#allocation5 + $0x38] ss:$12 sps:$4 sm:$0xff]  }
  0x5c   :  { %908 = vmatpush1.bf16.msra.mxu0 %v1455_v54  ;;  %v1496_v54 = vld [vmem:[#allocation5 + $0x1b8] ss:$12 sps:$4 sm:$0xff]  }
  0x5d   :  { %949 = vmatpush1.bf16.msra.mxu1 %v1458_v55  ;;  %909 = vmatprep.subr.bf16.mxu0 %v1463_v56  ;;  %v1497_v55 = vld [vmem:[#allocation5 + $0x110] ss:$12 sps:$4 sm:$0xff]  }
  0x5e   :  { %950 = vmatprep.subr.bf16.mxu1 %v1466_v57  ;;  %v1498_v56 = vld [vmem:[#allocation5 + $0x290] ss:$12 sps:$4 sm:$0xff]  }
  0x5f   :  { %v1499_v57 = vld [vmem:[#allocation5 + $0x50] ss:$12 sps:$4 sm:$0xff]  }
  0x60   :  { %910 = vmatpush1.bf16.msra.mxu0 %v1461_v58  ;;  %v1500_v58 = vld [vmem:[#allocation5 + $0x1d0] ss:$12 sps:$4 sm:$0xff]  }
  0x61   :  { %951 = vmatpush1.bf16.msra.mxu1 %v1464_v59  ;;  %911 = vmatprep.subr.bf16.mxu0 %v1469_v60  ;;  %v1501_v59 = vld [vmem:[#allocation5 + $0x128] ss:$12 sps:$4 sm:$0xff]  }
  0x62   :  { %952 = vmatprep.subr.bf16.mxu1 %v1472_v61  ;;  %v1502_v60 = vld [vmem:[#allocation5 + $0x2a8] ss:$12 sps:$4 sm:$0xff]  }
  0x63   :  { %v1503_v61 = vld [vmem:[#allocation5 + $0x68] ss:$12 sps:$4 sm:$0xff]  }
  0x64   :  { %912 = vmatpush1.bf16.msra.mxu0 %v1467_v62  ;;  %v1504_v62 = vld [vmem:[#allocation5 + $0x1e8] ss:$12 sps:$4 sm:$0xff]  }
  0x65   :  { %953 = vmatpush1.bf16.msra.mxu1 %v1470_v63  ;;  %913 = vmatprep.subr.bf16.mxu0 %v1475_v0  ;;  %v1505_v63 = vld [vmem:[#allocation5 + $0x140] ss:$12 sps:$4 sm:$0xff]  }
  0x66   :  { %954 = vmatprep.subr.bf16.mxu1 %v1478_v1  ;;  %v1506_v0 = vld [vmem:[#allocation5 + $0x2c0] ss:$12 sps:$4 sm:$0xff]  }
  0x67   :  { %v1507_v1 = vld [vmem:[#allocation5 + $0x80] ss:$12 sps:$4 sm:$0xff]  }
  0x68   :  { %914 = vmatpush1.bf16.msra.mxu0 %v1473_v2  ;;  %v1508_v2 = vld [vmem:[#allocation5 + $0x200] ss:$12 sps:$4 sm:$0xff]  }
  0x69   :  { %955 = vmatpush1.bf16.msra.mxu1 %v1476_v3  ;;  %915 = vmatprep.subr.bf16.mxu0 %v1481_v4  ;;  %v1509_v3 = vld [vmem:[#allocation5 + $0x158] ss:$12 sps:$4 sm:$0xff]  }
  0x6a   :  { %956 = vmatprep.subr.bf16.mxu1 %v1484_v5  ;;  %v1510_v4 = vld [vmem:[#allocation5 + $0x2d8] ss:$12 sps:$4 sm:$0xff]  }
  0x6b   :  { %v1511_v5 = vld [vmem:[#allocation5 + $0x98] ss:$12 sps:$4 sm:$0xff]  }
  0x6c   :  { %916 = vmatpush1.bf16.msra.mxu0 %v1479_v6  ;;  %v1512_v6 = vld [vmem:[#allocation5 + $0x218] ss:$12 sps:$4 sm:$0xff]  }
  0x6d   :  { %957 = vmatpush1.bf16.msra.mxu1 %v1482_v7  ;;  %1324 = vmatprep.subr.bf16.mxu0 %v1485_v8  ;;  %v1513_v7 = vld [vmem:[#allocation5 + $0x170] ss:$12 sps:$4 sm:$0xff]  }
  0x6e   :  { %1346 = vmatprep.subr.bf16.mxu1 %v1486_v9  ;;  %v1514_v8 = vld [vmem:[#allocation5 + $0x2f0] ss:$12 sps:$4 sm:$0xff]  }
  0x6f   :  { %v1515_v9 = vld [vmem:[#allocation5 + $0xb0] ss:$12 sps:$4 sm:$0xff]  }
 0x102   :  { %v149_v25 = vpop.f32.mrb[0].mxu0 }
 0x103   :  { %v190_v26 = vpop.f32.mrb[0].mxu1  ;;  %v150_v27 = vadd.f32 %v149_v25, %v74_v21  ;;  %v151_v29 = vpop.f32.mrb[1].mxu0  ;;  %v1054_v25 = vrot.slane %v334_v11, %v1670_v19 }
 0x104   :  { %v191_v28 = vadd.f32 %v190_v26, %v82_v22  ;;  %v192_v30 = vpop.f32.mrb[1].mxu1  ;;  %v152_v31 = vadd.f32 %v151_v29, %v78_v23  ;;  %v153_v33 = vpop.f32.mrb[2].mxu0  ;;  %v1094_v22 = vsub.s32 6, %v1658_v15  ;;  %v361_v23 = vrot.slane %v346_v13, %v1661_v16 }
 0x105   :  { %v193_v32 = vadd.f32 %v192_v30, %v86_v24  ;;  %v194_v34 = vpop.f32.mrb[2].mxu1  ;;  %v197_v35 = vmax.f32 %v150_v27, 0.0  ;;  %v154_v37 = vpop.f32.mrb[3].mxu0  ;;  %v365_v26 = vrot.slane %v350_v14, %v1661_v16  ;;  %v1058_v27 = vrot.slane %v334_v11, %v1057_v18  ;;  %v335_v18 = vld [vmem:[%s1757_s5 + $0x8] sm:$0xf] }
 0x106   :  { %v199_v36 = vmax.f32 %v191_v28, 0.0  ;;  %v195_v38 = vpop.f32.mrb[3].mxu1  ;;  %v198_v39 = vmax.f32 %v152_v31, 0.0  ;;  %v1693_v21 = vpop.permute.xlu0 %338  ;;  %v1131_v28 = vsub.s32 7, %v1658_v15  ;;  %v1091_v29 = vrot.slane %v334_v11, %v1664_v17 }
 0x107   :  { %v200_v40 = vmax.f32 %v193_v32, 0.0  ;;  %v1681_v46 = vpack.c.bf16 %v197_v35, %v197_v35  ;;  %v1697_v24 = vpop.permute.xlu1 %1085  ;;  %v1095_v30 = vrot.slane %v334_v11, %v1094_v22  ;;  %v370_v31 = vmul.f32 %v361_v23, %v1693_v21 }
 0x108   :  { %v1679_v41 = vpack.c.bf16 %v199_v36, %v199_v36  ;;  %v202_v42 = vpack.c.bf16 %v198_v39, %v198_v39  ;;  %v1069_v32 = vrot.slane %v1054_v25, %v1670_v19  ;;  %v1128_v33 = vrot.slane %v334_v11, %v1673_v20 }
 0x109   :  { %v204_v43 = vpack.c.bf16 %v200_v40, %v200_v40  ;;  %v371_v34 = vmul.f32 %v365_v26, %v1693_v21  ;;  %v1073_v35 = vrot.slane %v1058_v27, %v1670_v19  ;;  %v1132_v37 = vrot.slane %v334_v11, %v1131_v28 }
 0x10a   :  { %917 = vmatprep.mubr.bf16.mxu0 %v202_v42  ;;  %v1708_v36 = vpop.permute.xlu0 %1048  ;;  %v1106_v38 = vrot.slane %v1091_v29, %v1664_v17  ;;  %v354_v22 = vrot.slane %v335_v18, %v1661_v16  ;;  %v1062_v25 = vrot.slane %v335_v18, %v1670_v19  ;;  %v1099_v26 = vrot.slane %v335_v18, %v1664_v17 }
 0x10b   :  { %958 = vmatprep.mubr.bf16.mxu1 %v204_v43  ;;  %918 = vmatmul.mubr.bf16.vlgmr.msra.gmra.mrb[4].mxu0 %v1681_v46  ;;  %v1711_v39 = vpop.permute.xlu1 %1122 }
 0x10c   :  { %959 = vmatmul.mubr.bf16.vlgmr.msra.gmra.mrb[4].mxu1 %v1679_v41  ;;  %1325 = vmatpush3.bf16.msra.mxu0 %v1487_v44  ;;  %v369_v23 = vrot.slane %v354_v22, %v1661_v16 }
 0x10d   :  { %1347 = vmatpush3.bf16.msra.mxu1 %v1488_v45  ;;  %999 = vmatprep.mubr.bf16.mxu0 %v202_v42  ;;  %v1078_v45 = vmul.f32 %v1069_v32, %v1708_v36  ;;  %v1077_v32 = vrot.slane %v1062_v25, %v1670_v19 }
 0x10e   :  { %1039 = vmatprep.mubr.bf16.mxu1 %v204_v43  ;;  %1326 = vmatprep.subr.bf16.mxu0 %v1489_v47  ;;  %v372_v29 = vmul.f32 %v369_v23, %v1693_v21 }
 0x10f   :  { %1348 = vmatprep.subr.bf16.mxu1 %v1490_v48  ;;  %v1079_v48 = vmul.f32 %v1073_v35, %v1708_v36 }
 0x110   :  { %1327 = vmatpush3.bf16.msra.mxu0 %v1491_v49 }
 0x111   :  { %1349 = vmatpush3.bf16.msra.mxu1 %v1492_v50  ;;  %1328 = vmatprep.subr.bf16.mxu0 %v1493_v51  ;;  %v1147_v51 = vrot.slane %v1132_v37, %v1673_v20 }
 0x112   :  { %1350 = vmatprep.subr.bf16.mxu1 %v1494_v52 }
 0x114   :  { %1329 = vmatpush3.bf16.msra.mxu0 %v1495_v53  ;;  %v1115_v53 = vmul.f32 %v1106_v38, %v1697_v24 }
 0x115   :  { %1351 = vmatpush3.bf16.msra.mxu1 %v1496_v54  ;;  %1330 = vmatprep.subr.bf16.mxu0 %v1497_v55 }
 0x116   :  { %1352 = vmatprep.subr.bf16.mxu1 %v1498_v56 }
 0x118   :  { %1331 = vmatpush3.bf16.msra.mxu0 %v1499_v57 }
 0x119   :  { %1353 = vmatpush3.bf16.msra.mxu1 %v1500_v58  ;;  %1332 = vmatprep.subr.bf16.mxu0 %v1501_v59  ;;  %v1158_v58 = vld [vmem:[%s1758_s6] sm:$0x7] }
 0x11a   :  { %1354 = vmatprep.subr.bf16.mxu1 %v1502_v60 }
 0x11c   :  { %1333 = vmatpush3.bf16.msra.mxu0 %v1503_v61 }
 0x11d   :  { %1355 = vmatpush3.bf16.msra.mxu1 %v1504_v62  ;;  %1334 = vmatprep.subr.bf16.mxu0 %v1505_v63  ;;  %v1153_v62 = vmul.f32 %v1147_v51, %v1711_v39 }
 0x11e   :  { %1356 = vmatprep.subr.bf16.mxu1 %v1506_v0  ;;  %v1163_v0 = vrot.slane %v1158_v58, %v1661_v16 }
 0x120   :  { %1335 = vmatpush3.bf16.msra.mxu0 %v1507_v1 }
 0x121   :  { %1357 = vmatpush3.bf16.msra.mxu1 %v1508_v2  ;;  %1336 = vmatprep.subr.bf16.mxu0 %v1509_v3  ;;  %v1167_v2 = vrot.slane %v1158_v58, %v1670_v19  ;;  %v1181_v3 = vld [vmem:[%s1759_s7] sm:$0x7] }
 0x122   :  { %1358 = vmatprep.subr.bf16.mxu1 %v1510_v4 }
 0x124   :  { %1337 = vmatpush3.bf16.msra.mxu0 %v1511_v5 }
 0x125   :  { %1359 = vmatpush3.bf16.msra.mxu1 %v1512_v6  ;;  %1338 = vmatprep.subr.bf16.mxu0 %v1513_v7  ;;  %v1186_v7 = vrot.slane %v1181_v3, %v1661_v16 }
 0x126   :  { %1360 = vmatprep.subr.bf16.mxu1 %v1514_v8 }
 0x128   :  { %1339 = vmatpush3.bf16.msra.mxu0 %v1515_v9  ;;  %v1190_v9 = vrot.slane %v1181_v3, %v1670_v19 }
 0x129   :  { %1361 = vmatpush3.bf16.msra.mxu1 %v1516_v10 }
 0x12b   :  { %1000 = vmatmul.mubr.bf16.vlgmr.msra.gmra.mrb[8].mxu0 %v1681_v46  ;;  %v1143_v46 = vrot.slane %v1128_v33, %v1673_v20  ;;  %v1136_v33 = vrot.slane %v335_v18, %v1673_v20 }
 0x12c   :  { %1040 = vmatmul.mubr.bf16.vlgmr.msra.gmra.mrb[8].mxu1 %v1679_v41  ;;  %v1110_v41 = vrot.slane %v1095_v30, %v1664_v17 }
 0x12d   :  { %v1152_v60 = vmul.f32 %v1143_v46, %v1711_v39 }
 0x12e   :  { %v1116_v57 = vmul.f32 %v1110_v41, %v1697_v24 }
 0x1de   :  { %v919_v15 = vpop.f32.mrb[4].mxu0 }
 0x1df   :  { %v960_v40 = vpop.f32.mrb[4].mxu1  ;;  %v920_v42 = vadd.f32 %v919_v15, %v370_v31  ;;  %v921_v43 = vpop.f32.mrb[5].mxu0 }
 0x1e0   :  { %v962_v44 = vpop.f32.mrb[5].mxu1  ;;  %v922_v47 = vadd.f32 %v921_v43, %v371_v34  ;;  %v923_v49 = vpop.f32.mrb[6].mxu0  ;;  %v1151_v43 = vrot.slane %v1136_v33, %v1673_v20 }
 0x1e1   :  { %v964_v50 = vpop.f32.mrb[6].mxu1  ;;  %v961_v52 = vadd.f32 %v960_v40, %v920_v42  ;;  %v924_v54 = vpop.f32.mrb[7].mxu0  ;;  %v1114_v40 = vrot.slane %v1099_v26, %v1664_v17  ;;  %v1080_v42 = vmul.f32 %v1077_v32, %v1708_v36  ;;  %v1323_v36 = vld [vmem:[#allocation2] ss:$0 sm:$0xff] }
 0x1e2   :  { %v965_v55 = vpop.f32.mrb[7].mxu1  ;;  %v963_v56 = vadd.f32 %v962_v44, %v922_v47  ;;  %v1154_v19 = vmul.f32 %v1151_v43, %v1711_v39  ;;  %v1171_v47 = vrot.slane %v1158_v58, %v1664_v17  ;;  %v1194_v50 = vrot.slane %v1181_v3, %v1664_v17 }
 0x1e3   :  { %v1081_v59 = vadd.f32 %v1078_v45, %v961_v52  ;;  %v1117_v44 = vmul.f32 %v1114_v40, %v1697_v24 }
 0x1e4   :  { %v1082_v61 = vadd.f32 %v1079_v48, %v963_v56 }
 0x1e5   :  { %v1118_v63 = vadd.f32 %v1115_v53, %v1081_v59 }
 0x1e6   :  { %v1119_v1 = vadd.f32 %v1116_v57, %v1082_v61 }
 0x1e7   :  { %v1155_v4 = vadd.f32 %v1152_v60, %v1118_v63 }
 0x1e8   :  { %v1156_v5 = vadd.f32 %v1153_v62, %v1119_v1 }
 0x1e9   :  { %v1175_v6 = vadd.f32 %v1163_v0, %v1155_v4 }
 0x1ea   :  { %v1176_v8 = vadd.f32 %v1167_v2, %v1156_v5 }
 0x1eb   :  { %v1178_v10 = vmax.f32 %v1175_v6, 0.0 }
 0x1ec   :  { %v1179_v11 = vmax.f32 %v1176_v8, 0.0 }
 0x1ed   :  { %v1198_v12 = vmul.f32 %v1186_v7, %v1178_v10 }
 0x1ee   :  { %v1199_v13 = vmul.f32 %v1190_v9, %v1179_v11 }
 0x1f0   :  { %v1201_v14 = vadd.f32 %v1199_v13, %v1198_v12 }
 0x1fe   :  { %v1340_v27 = vpop.f32.mrb[8].mxu0 }
 0x1ff   :  { %v1362_v28 = vpop.f32.mrb[8].mxu1  ;;  %v1341_v30 = vpop.f32.mrb[9].mxu0 }
 0x200   :  { %v1363_v31 = vpop.f32.mrb[9].mxu1  ;;  %v1342_v34 = vadd.f32 %v1341_v30, %v1340_v27  ;;  %v1343_v37 = vpop.f32.mrb[10].mxu0 }
 0x201   :  { %v1364_v35 = vadd.f32 %v1363_v31, %v1362_v28  ;;  %v1365_v38 = vpop.f32.mrb[10].mxu1  ;;  %v1344_v15 = vpop.f32.mrb[11].mxu0 }
 0x202   :  { %v1366_v16 = vpop.f32.mrb[11].mxu1  ;;  %v1002_v41 = vadd.f32 %v1342_v34, %v372_v29 }
 0x204   :  { %v1042_v21 = vadd.f32 %v1364_v35, %v1002_v41 }
 0x206   :  { %v1083_v45 = vadd.f32 %v1080_v42, %v1042_v21 }
 0x208   :  { %v1120_v46 = vadd.f32 %v1117_v44, %v1083_v45 }
 0x20a   :  { %v1157_v48 = vadd.f32 %v1154_v19, %v1120_v46 }
 0x20c   :  { %v1177_v49 = vadd.f32 %v1171_v47, %v1157_v48 }
 0x20e   :  { %v1180_v51 = vmax.f32 %v1177_v49, 0.0 }
 0x210   :  { %v1200_v52 = vmul.f32 %v1194_v50, %v1180_v51 }
 0x212   :  { %v1202_v53 = vadd.f32 %v1201_v14, %v1200_v52 }
 0x214   :  { %1203 = vadd.xlane.f32.xlu1 %v1202_v53 }
 0x2a1   :  { %v1204_v20 = vpop.xlane.xlu1 %1203 }
 0x2a2   :  { %v1212_v54 = vadd.f32 %v1323_v36, %v1204_v20 }
 0x2a4   :  { %1214 = vst.msk [vmem:[%s1761_s9] sm:$0xff] %vm1213_vm1, %v1212_v54 }
 0x2a5   :  { %1219 = vsyncpa [#allocation4], 1 }
 0x2a6   :  { %1220 = vsyncpa [#allocation6], 1 }

</bundles_post_ra>
